<compile_context>
chip_gen: v7x
topology: tpu7x:2x2x1
jax: 0.10.0
libtpu: 0.0.40
codegen_flags: <defaults>
</compile_context>

<pallas_src>
import functools

import jax
import jax.numpy as jnp
from jax import lax
from jax.experimental import pallas as pl
from jax.experimental.pallas import tpu as pltpu

_EPS = 1e-5
_LANE = 128
_SUBLANE = 8
_VMEM_BUDGET = 20 * 1024 * 1024   # per-layer working-set target (safe on v7x 64 MiB)


def _round_up(x, m):
    return ((x + m - 1) // m) * m


def _pick_tile(total, target, unit):
    """Largest multiple-of-`unit` divisor of `total` that is <= max(target, unit)."""
    target = max(target, unit)
    best = unit
    c = unit
    while c <= total:
        if total % c == 0 and c <= target:
            best = c
        c += unit
    return best


# ---------------------------------------------------------------------------
# Fused kernel: matmul + BatchNorm (+ ReLU) in one pass
# ---------------------------------------------------------------------------
def _fused_dense_bn_kernel(x_ref, w_ref, g_ref, b_ref, o_ref, acc_ref,
                           *, batch, eps, relu, rows_padded):
    """h = x @ W.T accumulated into a full-height (Bp, bn) f32 column stripe;
    at the last K step the BatchNorm batch statistics + normalize + affine
    (+ ReLU) run as the matmul epilogue, so the pre-BN activations never touch
    HBM."""
    k = pl.program_id(1)

    @pl.when(k == 0)
    def _():
        acc_ref[...] = jnp.zeros_like(acc_ref)

    # Contract x[(Bp, bk)] with w[(bn, bk)] along K -> (Bp, bn); W stays in its
    # native PyTorch (OUT, IN) layout, no wrapper-side transpose.
    acc_ref[...] += lax.dot_general(
        x_ref[...], w_ref[...],
        dimension_numbers=(((1,), (1,)), ((), ())),
        preferred_element_type=jnp.float32)

    @pl.when(k == pl.num_programs(1) - 1)
    def _():
        h = acc_ref[...]                              # (Bp, bn) f32
        inv_b = jnp.float32(1.0 / batch)              # divide by the TRUE batch size
        mean = jnp.sum(h, axis=0, keepdims=True) * inv_b
        centered = h - mean
        if rows_padded:
            row_ok = lax.broadcasted_iota(jnp.int32, h.shape, 0) < batch
            centered = jnp.where(row_ok, centered, 0.0)
        # Two-pass (non-cancellative) biased variance — safer than E[x^2]-mean^2.
        var = jnp.sum(centered * centered, axis=0, keepdims=True) * inv_b
        scale = lax.rsqrt(var + eps) * g_ref[...]     # rstd * gamma (EUP rsqrt)
        y = centered * scale + b_ref[...]
        if relu:
            y = jnp.maximum(y, 0.0)
        if rows_padded:
            # Keep zero-padded rows exactly zero so downstream layers' batch
            # statistics stay correct when the batch was padded up to 8 rows.
            y = jnp.where(row_ok, y, 0.0)
        o_ref[...] = y.astype(o_ref.dtype)


# ---------------------------------------------------------------------------
# Fallback kernels (only used when Bp * bn * 4B overflows the VMEM budget)
# ---------------------------------------------------------------------------
def _matmul_kernel(x_ref, w_ref, h_ref, acc_ref):
    """h = x @ W.T, tiled over (M, N, K); K is the trailing reduction axis."""
    @pl.when(pl.program_id(2) == 0)
    def _():
        acc_ref[...] = jnp.zeros_like(acc_ref)

    acc_ref[...] += lax.dot_general(
        x_ref[...], w_ref[...],
        dimension_numbers=(((1,), (1,)), ((), ())),
        preferred_element_type=jnp.float32)

    @pl.when(pl.program_id(2) == pl.num_programs(2) - 1)
    def _():
        h_ref[...] = acc_ref[...].astype(h_ref.dtype)


def _bn_stats_kernel(h_ref, g_ref, b_ref, scale_ref, shift_ref, sum_ref, sq_ref,
                     *, batch, eps):
    """Per-feature scale = rstd*gamma and shift = beta - mean*scale (gamma/beta
    folded here so the apply pass is a single FMA)."""
    b = pl.program_id(1)

    @pl.when(b == 0)
    def _():
        sum_ref[...] = jnp.zeros_like(sum_ref)
        sq_ref[...] = jnp.zeros_like(sq_ref)

    h = h_ref[...]
    sum_ref[...] += jnp.sum(h, axis=0, keepdims=True)
    sq_ref[...] += jnp.sum(h * h, axis=0, keepdims=True)

    @pl.when(b == pl.num_programs(1) - 1)
    def _():
        inv_b = jnp.float32(1.0 / batch)
        mean = sum_ref[...] * inv_b
        var = jnp.maximum(sq_ref[...] * inv_b - mean * mean, 0.0)  # biased var
        scale = lax.rsqrt(var + eps) * g_ref[...]
        scale_ref[...] = scale
        shift_ref[...] = b_ref[...] - mean * scale


def _bn_apply_kernel(h_ref, scale_ref, shift_ref, o_ref, *, relu, batch,
                     block_m, rows_padded):
    """y = h * scale + shift (+ optional fused ReLU).  scale/shift are resident
    full-width (1, Np) blocks (constant index_map -> DMA'd once)."""
    y = h_ref[...] * scale_ref[...] + shift_ref[...]
    if relu:
        y = jnp.maximum(y, 0.0)
    if rows_padded:
        last = pl.num_programs(0) - 1

        @pl.when(pl.program_id(0) == last)
        def _():
            row = (lax.broadcasted_iota(jnp.int32, y.shape, 0)
                   + pl.program_id(0) * block_m)
            o_ref[...] = jnp.where(row < batch, y, 0.0).astype(o_ref.dtype)

        @pl.when(pl.program_id(0) != last)
        def _():
            o_ref[...] = y.astype(o_ref.dtype)
    else:
        o_ref[...] = y.astype(o_ref.dtype)


# ---------------------------------------------------------------------------
# One Dense(use_batchnorm=True) layer = Linear(no bias) + BatchNorm1d (+ ReLU)
# ---------------------------------------------------------------------------
def _fused_vmem_bytes(Bp, bn, bk, op_bytes, out_bytes):
    return (2 * (Bp * bk + bn * bk) * op_bytes   # double-buffered x & W tiles
            + Bp * bn * 4                        # f32 accumulator scratch
            + 2 * Bp * bn * out_bytes            # double-buffered output tile
            + 4 * bn * 4)                        # gamma / beta tiles


def _dense_bn_layer(xp, wp, gp, bp, *, batch, relu, out_dtype, use_fused=None,
                    matmul_dtype=None):
    """xp: (Bp, Kp) zero-padded input; wp: (Np, Kp) zero-padded PyTorch-layout
    weight; gp/bp: (1, Np) zero-padded gamma/beta.  Returns (Bp, Np) whose
    padded rows / feature columns are exactly zero."""
    Bp, Kp = xp.shape
    Np, Kw = wp.shape
    assert Kw == Kp and Bp % _SUBLANE == 0 and Np % _LANE == 0 and Kp % _LANE == 0

    if matmul_dtype is not None:
        xp = xp.astype(matmul_dtype)
        wp = wp.astype(matmul_dtype)
    op_bytes = jnp.dtype(xp.dtype).itemsize
    out_bytes = jnp.dtype(out_dtype).itemsize
    rows_padded = Bp != batch

    # ---- tile selection ------------------------------------------------------
    # Lane-dense N/K tiles: multiples of 128 that exactly divide the 128-rounded
    # padded sizes (no over-padding waste).  Grow toward 512 / 1024 for the
    # v6e / v7x rooflines, keep >=2 N blocks when possible so both v7x
    # TensorCores get work, then shrink until the footprint fits the budget.
    bn = _pick_tile(Np, 512, _LANE)
    if Np // bn < 2 and Np >= 2 * _LANE:
        bn = _pick_tile(Np, Np // 2, _LANE)
    bk = _pick_tile(Kp, 1024, _LANE)

    def shrink_lane(total, cur):
        return cur if cur <= _LANE else _pick_tile(total, cur - _LANE, _LANE)

    def shrink_sub(total, cur):
        return cur if cur <= _SUBLANE else _pick_tile(total, cur - _SUBLANE, _SUBLANE)

    fused_fits = False
    fbn, fbk = bn, bk
    if use_fused is None or use_fused:
        while True:
            if _fused_vmem_bytes(Bp, fbn, fbk, op_bytes, out_bytes) <= _VMEM_BUDGET:
                fused_fits = True
                break
            if fbk > _LANE:
                fbk = shrink_lane(Kp, fbk)
            elif fbn > _LANE:
                fbn = shrink_lane(Np, fbn)
            else:
                break
        if use_fused:
            fused_fits = True   # caller forced the fused path

    if fused_fits:
        est = _fused_vmem_bytes(Bp, fbn, fbk, op_bytes, out_bytes)
        vmem_limit = int(min(max(2 * est, 32 * 1024 * 1024), 48 * 1024 * 1024))
        return pl.pallas_call(
            functools.partial(_fused_dense_bn_kernel, batch=batch, eps=_EPS,
                              relu=relu, rows_padded=rows_padded),
            out_shape=jax.ShapeDtypeStruct((Bp, Np), out_dtype),
            grid=(Np // fbn, Kp // fbk),
            in_specs=[
                pl.BlockSpec((Bp, fbk), lambda j, k: (0, k)),
                pl.BlockSpec((fbn, fbk), lambda j, k: (j, k)),
                pl.BlockSpec((1, fbn), lambda j, k: (0, j)),
                pl.BlockSpec((1, fbn), lambda j, k: (0, j)),
            ],
            out_specs=pl.BlockSpec((Bp, fbn), lambda j, k: (0, j)),
            scratch_shapes=[pltpu.VMEM((Bp, fbn), jnp.float32)],
            compiler_params=pltpu.CompilerParams(
                dimension_semantics=("parallel", "arbitrary"),
                vmem_limit_bytes=vmem_limit),
        )(xp, wp, gp, bp)

    # ---- fallback: 3 kernels (huge batches only) -----------------------------
    f32 = jnp.float32
    bm = _pick_tile(Bp, 256, _SUBLANE)
    while (2 * (bm * bk + bn * bk) * op_bytes + 3 * bm * bn * 4) > _VMEM_BUDGET:
        if bk > _LANE:
            bk = shrink_lane(Kp, bk)
        elif bn > _LANE:
            bn = shrink_lane(Np, bn)
        elif bm > _SUBLANE:
            bm = shrink_sub(Bp, bm)
        else:
            break

    h = pl.pallas_call(
        _matmul_kernel,
        out_shape=jax.ShapeDtypeStruct((Bp, Np), f32),
        grid=(Bp // bm, Np // bn, Kp // bk),
        in_specs=[pl.BlockSpec((bm, bk), lambda i, j, k: (i, k)),
                  pl.BlockSpec((bn, bk), lambda i, j, k: (j, k))],
        out_specs=pl.BlockSpec((bm, bn), lambda i, j, k: (i, j)),
        scratch_shapes=[pltpu.VMEM((bm, bn), f32)],
        compiler_params=pltpu.CompilerParams(
            dimension_semantics=("parallel", "parallel", "arbitrary"),
            vmem_limit_bytes=32 * 1024 * 1024),
    )(xp, wp)

    scale, shift = pl.pallas_call(
        functools.partial(_bn_stats_kernel, batch=batch, eps=_EPS),
        out_shape=(jax.ShapeDtypeStruct((1, Np), f32),
                   jax.ShapeDtypeStruct((1, Np), f32)),
        grid=(Np // bn, Bp // bm),
        in_specs=[pl.BlockSpec((bm, bn), lambda j, b: (b, j)),
                  pl.BlockSpec((1, bn), lambda j, b: (0, j)),
                  pl.BlockSpec((1, bn), lambda j, b: (0, j))],
        out_specs=(pl.BlockSpec((1, bn), lambda j, b: (0, j)),
                   pl.BlockSpec((1, bn), lambda j, b: (0, j))),
        scratch_shapes=[pltpu.VMEM((1, bn), f32), pltpu.VMEM((1, bn), f32)],
        compiler_params=pltpu.CompilerParams(
            dimension_semantics=("parallel", "arbitrary")),
    )(h, gp, bp)

    bm_a = _pick_tile(Bp, 512, _SUBLANE)
    while bm_a > _SUBLANE and 2 * bm_a * Np * (4 + out_bytes) > _VMEM_BUDGET:
        bm_a = shrink_sub(Bp, bm_a)

    y = pl.pallas_call(
        functools.partial(_bn_apply_kernel, relu=relu, batch=batch,
                          block_m=bm_a, rows_padded=rows_padded),
        out_shape=jax.ShapeDtypeStruct((Bp, Np), out_dtype),
        grid=(Bp // bm_a,),
        in_specs=[pl.BlockSpec((bm_a, Np), lambda i: (i, 0)),
                  pl.BlockSpec((1, Np), lambda i: (0, 0)),
                  pl.BlockSpec((1, Np), lambda i: (0, 0))],
        out_specs=pl.BlockSpec((bm_a, Np), lambda i: (i, 0)),
        compiler_params=pltpu.CompilerParams(
            dimension_semantics=("parallel",),
            vmem_limit_bytes=32 * 1024 * 1024),
    )(h, scale, shift)
    return y


# ---------------------------------------------------------------------------
# ProjectionHead forward
# ---------------------------------------------------------------------------
def prepare_projection_head_params(params):
    """One-time padding of each layer's (W, gamma, beta) to lane-aligned shapes
    (keeps weight padding out of the per-forward path).  W is in the PyTorch
    nn.Linear (out, in) layout.  gamma/beta are ZERO-padded so padded feature
    columns stay exactly zero downstream (do not change this to ones)."""
    prepared = []
    for (w, g, b) in params:
        N, K = w.shape
        Np, Kp = _round_up(N, _LANE), _round_up(K, _LANE)
        wp = jnp.pad(w, ((0, Np - N), (0, Kp - K)))
        gp = jnp.pad(g.reshape(1, -1), ((0, 0), (0, Np - N)))
        bp = jnp.pad(b.reshape(1, -1), ((0, 0), (0, Np - N)))
        prepared.append((wp, gp, bp, N, K))
    return tuple(prepared)


def projection_head_apply(x, prepared, head_type="nonlinear", *, use_fused=None,
                          matmul_dtype=None):
    B, K_in = x.shape
    Bp = _round_up(B, _SUBLANE)
    if matmul_dtype is None:
        # bf16 inputs automatically use the bf16 MXU path; f32 inputs keep f32
        # operands to preserve the PyTorch module's numerics (opt in via
        # matmul_dtype=jnp.bfloat16 for ~2x on the matmul phase).
        matmul_dtype = jnp.bfloat16 if x.dtype == jnp.bfloat16 else None

    if head_type == "linear":
        layers, relus = (prepared[0],), (False,)
    elif head_type == "nonlinear":
        layers, relus = tuple(prepared), (True, False)
    else:
        raise NotImplementedError(head_type)

    xp = jnp.pad(x, ((0, Bp - B), (0, layers[0][0].shape[1] - K_in)))
    h = xp
    for (wp, gp, bp, N, K), relu in zip(layers, relus):
        # Layer i's padded input width equals the previous layer's padded output
        # width (both round_up(.,128)), so the intermediate h is never re-padded.
        h = _dense_bn_layer(h, wp, gp, bp, batch=B, relu=relu, out_dtype=x.dtype,
                            use_fused=use_fused, matmul_dtype=matmul_dtype)
    return h[:B, :layers[-1][3]]


def projection_head_forward(x, params, head_type="nonlinear", *, use_fused=None,
                            matmul_dtype=None):
    """params:
      'linear'    -> ((W, gamma, beta),)            with W: (out, in)
      'nonlinear' -> ((W1, g1, b1), (W2, g2, b2))   with W1: (hidden, in), W2: (out, hidden)
    Every Dense inside ProjectionHead has use_batchnorm=True, so its Linear bias
    is disabled and BatchNorm1d uses training-mode (biased) batch statistics."""
    prepared = prepare_projection_head_params(params)
    return projection_head_apply(x, prepared, head_type, use_fused=use_fused,
                                 matmul_dtype=matmul_dtype)


# ---------------------------------------------------------------------------
# Main
# ---------------------------------------------------------------------------
if __name__ == "__main__":
    B, IN, HID, OUT = 16, 128, 64, 32

    key = jax.random.PRNGKey(0)
    kx, k1, k2, kg1, kb1, kg2, kb2 = jax.random.split(key, 7)

    x = jax.random.normal(kx, (B, IN), dtype=jnp.float32)
    w1 = jax.random.normal(k1, (HID, IN), dtype=jnp.float32) * (1.0 / jnp.sqrt(IN))
    w2 = jax.random.normal(k2, (OUT, HID), dtype=jnp.float32) * (1.0 / jnp.sqrt(HID))
    g1 = 1.0 + 0.1 * jax.random.normal(kg1, (HID,), dtype=jnp.float32)
    b1 = 0.1 * jax.random.normal(kb1, (HID,), dtype=jnp.float32)
    g2 = 1.0 + 0.1 * jax.random.normal(kg2, (OUT,), dtype=jnp.float32)
    b2 = 0.1 * jax.random.normal(kb2, (OUT,), dtype=jnp.float32)

    def dense_bn_ref(h, w, gamma, beta, relu):
        z = h @ w.T
        m = z.mean(axis=0, keepdims=True)
        v = ((z - m) ** 2).mean(axis=0, keepdims=True)     # biased batch variance
        z = (z - m) * lax.rsqrt(v + _EPS) * gamma + beta
        return jnp.maximum(z, 0.0) if relu else z

    params_nl = ((w1, g1, b1), (w2, g2, b2))
    y_ref = dense_bn_ref(dense_bn_ref(x, w1, g1, b1, True), w2, g2, b2, False)

    # ---- nonlinear head, fused (default) path -------------------------------
    y = jax.block_until_ready(projection_head_forward(x, params_nl, "nonlinear"))
    assert y.shape == (B, OUT)
    assert jnp.allclose(y, y_ref, atol=1e-4, rtol=1e-4), \
        float(jnp.max(jnp.abs(y - y_ref)))

    # ---- nonlinear head, forced 3-kernel fallback path -----------------------
    y_fb = jax.block_until_ready(
        projection_head_forward(x, params_nl, "nonlinear", use_fused=False))
    assert jnp.allclose(y_fb, y_ref, atol=1e-4, rtol=1e-4)

    # ---- linear head: Dense(IN->OUT)+BN --------------------------------------
    w3 = jax.random.normal(k2, (OUT, IN), dtype=jnp.float32) * (1.0 / jnp.sqrt(IN))
    y_lin = jax.block_until_ready(
        projection_head_forward(x, ((w3, g2, b2),), head_type="linear"))
    assert jnp.allclose(y_lin, dense_bn_ref(x, w3, g2, b2, False),
                        atol=1e-4, rtol=1e-4)

    # ---- batch not a multiple of 8: exercises padded-row masking -------------
    Bs = 12
    xs = x[:Bs]
    ys = jax.block_until_ready(projection_head_forward(xs, params_nl, "nonlinear"))
    ys_ref = dense_bn_ref(dense_bn_ref(xs, w1, g1, b1, True), w2, g2, b2, False)
    assert jnp.allclose(ys, ys_ref, atol=1e-4, rtol=1e-4)

    # TODO(synk): BatchNorm1d running_mean/running_var buffer updates (training-mode
    # side effect) are not emitted; they do not affect this forward output.
    print("KERNEL_OK")
</pallas_src>

<mosaic_0001>
module attributes {stable_mosaic.version = 11 : i64} {
  func.func @_fused_dense_bn_kernel(%arg0: i32, %arg1: i32, %arg2: memref<16x128xf32, #tpu.memory_space<vmem>>, %arg3: memref<128x128xf32, #tpu.memory_space<vmem>>, %arg4: memref<1x128xf32, #tpu.memory_space<vmem>>, %arg5: memref<1x128xf32, #tpu.memory_space<vmem>>, %arg6: memref<16x128xf32, #tpu.memory_space<vmem>>, %arg7: memref<16x128xf32, #tpu.memory_space<vmem>>) attributes {dimension_semantics = [#tpu.dimension_semantics<parallel>, #tpu.dimension_semantics<arbitrary>], iteration_bounds = array<i64: 1, 1>, scalar_prefetch = 0 : i64, scratch_operands = 1 : i64, tpu.core_type = #tpu.core_type<tc>, window_params = [{transform_indices = @transform_0, window_bounds = array<i64: 16, 128>}, {transform_indices = @transform_1, window_bounds = array<i64: 128, 128>}, {transform_indices = @transform_2, window_bounds = array<i64: 1, 128>}, {transform_indices = @transform_3, window_bounds = array<i64: 1, 128>}, {transform_indices = @transform_4, window_bounds = array<i64: 16, 128>}]} {
    %c0_i32 = arith.constant 0 : i32
    %0 = arith.cmpi eq, %arg1, %c0_i32 : i32
    %1 = arith.extui %0 : i1 to i32
    %c0_i32_0 = arith.constant 0 : i32
    %2 = arith.cmpi ne, %1, %c0_i32_0 : i32
    scf.if %2 {
      %cst_10 = arith.constant 0.000000e+00 : f32
      %12 = vector.broadcast %cst_10 : f32 to vector<16x128xf32>
      %c0_11 = arith.constant 0 : index
      %c0_12 = arith.constant 0 : index
      %13 = vector.load %arg7[%c0_11, %c0_12] : memref<16x128xf32, #tpu.memory_space<vmem>>, vector<16x128xf32>
      tpu.vector_store %arg7[%c0_11, %c0_12], %12 {strides = array<i32>} : memref<16x128xf32, #tpu.memory_space<vmem>>, vector<16x128xf32>,
    } else {
    }
    %c0 = arith.constant 0 : index
    %c0_1 = arith.constant 0 : index
    %3 = vector.load %arg7[%c0, %c0_1] : memref<16x128xf32, #tpu.memory_space<vmem>>, vector<16x128xf32>
    %c0_2 = arith.constant 0 : index
    %c0_3 = arith.constant 0 : index
    %4 = vector.load %arg2[%c0_2, %c0_3] : memref<16x128xf32, #tpu.memory_space<vmem>>, vector<16x128xf32>
    %c0_4 = arith.constant 0 : index
    %c0_5 = arith.constant 0 : index
    %5 = vector.load %arg3[%c0_4, %c0_5] : memref<128x128xf32, #tpu.memory_space<vmem>>, vector<128x128xf32>
    %cst = arith.constant dense<0.000000e+00> : vector<16x128xf32>
    %6 = tpu.matmul %4, %5, %cst {dimension_numbers = #tpu.dot_dimension_numbers<[1], [1], [0], [0], [0, 0, 1, 0], [], []>} : vector<16x128xf32>, vector<128x128xf32>, vector<16x128xf32> -> vector<16x128xf32>
    %7 = arith.addf %3, %6 : vector<16x128xf32>
    %c0_6 = arith.constant 0 : index
    %c0_7 = arith.constant 0 : index
    %8 = vector.load %arg7[%c0_6, %c0_7] : memref<16x128xf32, #tpu.memory_space<vmem>>, vector<16x128xf32>
    tpu.vector_store %arg7[%c0_6, %c0_7], %7 {strides = array<i32>} : memref<16x128xf32, #tpu.memory_space<vmem>>, vector<16x128xf32>,
    %c0_i32_8 = arith.constant 0 : i32
    %9 = arith.cmpi eq, %arg1, %c0_i32_8 : i32
    %10 = arith.extui %9 : i1 to i32
    %c0_i32_9 = arith.constant 0 : i32
    %11 = arith.cmpi ne, %10, %c0_i32_9 : i32
    scf.if %11 {
      %c0_10 = arith.constant 0 : index
      %c0_11 = arith.constant 0 : index
      %12 = vector.load %arg7[%c0_10, %c0_11] : memref<16x128xf32, #tpu.memory_space<vmem>>, vector<16x128xf32>
      %cst_12 = arith.constant dense<0.000000e+00> : vector<128xf32>
      %13 = vector.multi_reduction <add>, %12, %cst_12 [0] : vector<16x128xf32> to vector<128xf32>
      %14 = vector.shape_cast %13 : vector<128xf32> to vector<1x128xf32>
      %cst_13 = arith.constant 6.250000e-02 : f32
      %15 = vector.broadcast %cst_13 : f32 to vector<1x128xf32>
      %16 = arith.mulf %14, %15 : vector<1x128xf32>
      %17 = vector.broadcast %16 : vector<1x128xf32> to vector<16x128xf32>
      %18 = arith.subf %12, %17 : vector<16x128xf32>
      %19 = arith.mulf %18, %18 : vector<16x128xf32>
      %cst_14 = arith.constant dense<0.000000e+00> : vector<128xf32>
      %20 = vector.multi_reduction <add>, %19, %cst_14 [0] : vector<16x128xf32> to vector<128xf32>
      %21 = vector.shape_cast %20 : vector<128xf32> to vector<1x128xf32>
      %cst_15 = arith.constant 6.250000e-02 : f32
      %22 = vector.broadcast %cst_15 : f32 to vector<1x128xf32>
      %23 = arith.mulf %21, %22 : vector<1x128xf32>
      %cst_16 = arith.constant 9.99999974E-6 : f32
      %24 = vector.broadcast %cst_16 : f32 to vector<1x128xf32>
      %25 = arith.addf %23, %24 : vector<1x128xf32>
      %26 = math.rsqrt %25 : vector<1x128xf32>
      %c0_17 = arith.constant 0 : index
      %c0_18 = arith.constant 0 : index
      %27 = vector.load %arg4[%c0_17, %c0_18] : memref<1x128xf32, #tpu.memory_space<vmem>>, vector<1x128xf32>
      %28 = arith.mulf %26, %27 : vector<1x128xf32>
      %29 = vector.broadcast %28 : vector<1x128xf32> to vector<16x128xf32>
      %30 = arith.mulf %18, %29 : vector<16x128xf32>
      %c0_19 = arith.constant 0 : index
      %c0_20 = arith.constant 0 : index
      %31 = vector.load %arg5[%c0_19, %c0_20] : memref<1x128xf32, #tpu.memory_space<vmem>>, vector<1x128xf32>
      %32 = vector.broadcast %31 : vector<1x128xf32> to vector<16x128xf32>
      %33 = arith.addf %30, %32 : vector<16x128xf32>
      %cst_21 = arith.constant 0.000000e+00 : f32
      %34 = vector.broadcast %cst_21 : f32 to vector<16x128xf32>
      %35 = arith.maximumf %33, %34 : vector<16x128xf32>
      %c0_22 = arith.constant 0 : index
      %c0_23 = arith.constant 0 : index
      %36 = vector.load %arg6[%c0_22, %c0_23] : memref<16x128xf32, #tpu.memory_space<vmem>>, vector<16x128xf32>
      tpu.vector_store %arg6[%c0_22, %c0_23], %35 {strides = array<i32>} : memref<16x128xf32, #tpu.memory_space<vmem>>, vector<16x128xf32>,
    } else {
    }
    return
  }
  func.func @transform_0(%arg0: i32, %arg1: i32) -> (i32, i32) {
    %c0_i32 = arith.constant 0 : i32
    %c0_i32_0 = arith.constant 0 : i32
    return %c0_i32, %arg1 : i32, i32
  }
  func.func @transform_1(%arg0: i32, %arg1: i32) -> (i32, i32) {
    %c0_i32 = arith.constant 0 : i32
    return %arg0, %arg1 : i32, i32
  }
  func.func @transform_2(%arg0: i32, %arg1: i32) -> (i32, i32) {
    %c0_i32 = arith.constant 0 : i32
    %c0_i32_0 = arith.constant 0 : i32
    return %c0_i32, %arg0 : i32, i32
  }
  func.func @transform_3(%arg0: i32, %arg1: i32) -> (i32, i32) {
    %c0_i32 = arith.constant 0 : i32
    %c0_i32_0 = arith.constant 0 : i32
    return %c0_i32, %arg0 : i32, i32
  }
  func.func @transform_4(%arg0: i32, %arg1: i32) -> (i32, i32) {
    %c0_i32 = arith.constant 0 : i32
    %c0_i32_0 = arith.constant 0 : i32
    return %c0_i32, %arg0 : i32, i32
  }
}

</mosaic_0001>

<bundles_post_ra>
// kernel: tpu_custom_call.1
= control target key start
LH: loop header
LB: loop body
LE: loop exit
PB: predicated region body
PF: predicated region fallthrough
CT: control target
= control target key end

     0   :  { %9 = vsyncpa [#allocation4], 0  ;;  %s463_s0 = inlined_call_operand.hbm [shape: f32[16,128], index: 0, kind: input, shape index: {}]   ;;  %s464_s1 = inlined_call_operand.hbm [shape: f32[128,128], index: 1, kind: input, shape index: {}]   ;;  %s465_s2 = inlined_call_operand.vmem [shape: f32[1,128], index: 2, kind: input, shape index: {}]   ;;  %s466_s3 = inlined_call_operand.vmem [shape: f32[1,128], index: 3, kind: input, shape index: {}]   ;;  %s467_s4 = inlined_call_operand.hbm [shape: f32[16,128], index: 4, kind: output, shape index: {}]  }
   0x1   :  { %10 = vsyncpa [#allocation7], 0 }
   0x2   :  { %11 = vsyncpa [#allocation5], 0  ;;  %s382_s15 = smov [#allocation3]   ;;  %s310_s19 = scalar_lea.hbm %s463_s0, 256 }
   0x3   :  { %s17_s16 = sshll.u32 %s382_s15, 4  ;;  %p311_p0 = scmp.ne.s32.totalorder %s463_s0, %s310_s19  ;;  %s18_s16 = int_to_ptr.vmem [resolvable:$true] %s17_s16 }
   0x4   :  { %p314_p1 = scmp.lt.u32.totalorder %s310_s19, %s463_s0 }
   0x6   :  { %p316_p2 = pnand %p314_p1, %p311_p0 }
   0x8   :  { %319 = shalt.err (!%p316_p2)
}
   0x9   :  { %s320_s24 = scalar_lea.vmem %s18_s16, 256  ;;  %p325_p4 = scmp.lt.s32.totalorder %s18_s16, %s18_s16 }
   0xa   :  { %p321_p3 = scmp.ne.s32.totalorder %s18_s16, %s320_s24  ;;  %p326_p5 = scmp.lt.s32.totalorder %s320_s24, %s320_s24 }
   0xc   :  { %p327_p6 = por %p326_p5, %p325_p4 }
   0xe   :  { %p328_p7 = pnand %p327_p6, %p321_p3 }
  0x10   :  { %331 = shalt.err (!%p328_p7)
}
  0x11   :  { %s383_s25 = smov 128   ;;  %s384_s26 = smov 8  }
  0x12   :  { %23 = dma.hbm_to_vmem [thread:$0]  %s463_s0, 256, %s18_s16, [#allocation4], %s383_s25, %s383_s25, %s384_s26  }
  0x13   :  { %s385_s29 = smov [#allocation6]   ;;  %s332_s7 = scalar_lea.hbm %s464_s1, 2048 }
  0x14   :  { %s29_s30 = sshll.u32 %s385_s29, 4  ;;  %p333_p8 = scmp.ne.s32.totalorder %s464_s1, %s332_s7  ;;  %s30_s30 = int_to_ptr.vmem [resolvable:$true] %s29_s30 }
  0x15   :  { %p336_p9 = scmp.lt.u32.totalorder %s332_s7, %s464_s1 }
  0x17   :  { %p338_p10 = pnand %p336_p9, %p333_p8 }
  0x19   :  { %341 = shalt.err (!%p338_p10)
}
  0x1a   :  { %s342_s12 = scalar_lea.vmem %s30_s30, 2048  ;;  %p347_p12 = scmp.lt.s32.totalorder %s30_s30, %s30_s30 }
  0x1b   :  { %p343_p11 = scmp.ne.s32.totalorder %s30_s30, %s342_s12  ;;  %p348_p13 = scmp.lt.s32.totalorder %s342_s12, %s342_s12 }
  0x1d   :  { %p349_p0 = por %p348_p13, %p347_p12 }
  0x1f   :  { %p350_p1 = pnand %p349_p0, %p343_p11 }
  0x21   :  { %353 = shalt.err (!%p350_p1)
}
  0x22   :  { %35 = dma.hbm_to_vmem [thread:$0]  %s464_s1, 2048, %s30_s30, [#allocation7], %s383_s25, %s383_s25, %s384_s26  }
  0x23   :  { %376 = dma.done.wait [#allocation4], 256  }
  0x24   :  { %377 = vsyncadd [#allocation4], 4294967040 }
  0x25   :  { %378 = dma.done.wait [#allocation7], 2048  }
  0x26   :  { %379 = vsyncadd [#allocation7], 4294965248  ;;  %v56_v0 = vld [vmem:[#allocation6] sm:$0xff]  ;;  %v57_v1 = vld [vmem:[#allocation6 + $0x8] sm:$0xff]  ;;  %v180_v49 = vlaneseq  ;;  %s386_s17 = smov [#allocation8]  }
  0x27   :  { %v58_v2 = vld [vmem:[#allocation6 + $0x10] sm:$0xff]  ;;  %v271_v3 = vpack.c.bf16 %v57_v1, %v56_v0  ;;  %v59_v4 = vld [vmem:[#allocation6 + $0x18] sm:$0xff]  ;;  %v60_v7 = vld [vmem:[#allocation6 + $0x20] sm:$0xff]  ;;  %s204_s18 = sshll.u32 %s386_s17, 4  ;;  %s205_s18 = int_to_ptr.vmem [resolvable:$true] %s204_s18 }
  0x28   :  { %v275_v5 = vpack.c.bf16 %v59_v4, %v58_v2  ;;  %v54_v6 = vld [vmem:[#allocation3] sm:$0xff]  ;;  %v61_v8 = vld [vmem:[#allocation6 + $0x28] sm:$0xff]  ;;  %v63_v11 = vld [vmem:[#allocation6 + $0x38] sm:$0xff]  ;;  %v181_v50 = vshrl.u32 %v180_v49, 7  ;;  %p359_p3 = scmp.lt.s32.totalorder %s205_s18, %s205_s18 }
  0x29   :  { %272 = vmatprep.subr.bf16.mxu0 %v271_v3  ;;  %268 = vmatprep.mubr.f32.mxu0 %v54_v6  ;;  %v279_v9 = vpack.c.bf16 %v61_v8, %v60_v7  ;;  %v62_v10 = vld [vmem:[#allocation6 + $0x30] sm:$0xff]  ;;  %v64_v13 = vld [vmem:[#allocation6 + $0x40] sm:$0xff]  ;;  %v65_v14 = vld [vmem:[#allocation6 + $0x48] sm:$0xff] }
  0x2a   :  { %274 = vmatpush3.bf16.xpose.msra.mxu0 %v271_v3  ;;  %v283_v12 = vpack.c.bf16 %v63_v11, %v62_v10  ;;  %v287_v15 = vpack.c.bf16 %v65_v14, %v64_v13  ;;  %v66_v16 = vld [vmem:[#allocation6 + $0x50] sm:$0xff]  ;;  %v67_v17 = vld [vmem:[#allocation6 + $0x58] sm:$0xff]  ;;  %v68_v19 = vld [vmem:[#allocation6 + $0x60] sm:$0xff]  ;;  %v182_v52 = vsub.s32 0, %v181_v50 }
  0x2b   :  { %276 = vmatprep.subr.bf16.mxu0 %v275_v5  ;;  %v291_v18 = vpack.c.bf16 %v67_v17, %v66_v16  ;;  %v69_v20 = vld [vmem:[#allocation6 + $0x68] sm:$0xff]  ;;  %v70_v22 = vld [vmem:[#allocation6 + $0x70] sm:$0xff]  ;;  %v71_v23 = vld [vmem:[#allocation6 + $0x78] sm:$0xff] }
  0x2c   :  { %v295_v21 = vpack.c.bf16 %v69_v20, %v68_v19  ;;  %v299_v24 = vpack.c.bf16 %v71_v23, %v70_v22  ;;  %v55_v25 = vld [vmem:[#allocation3 + $0x8] sm:$0xff]  ;;  %v178_v51 = vld [vmem:[%s465_s2] sm:$0x1]  ;;  %s354_s2 = scalar_lea.vmem %s205_s18, 256 }
  0x2d   :  { %v217_v56 = vld [vmem:[%s466_s3] ss:$0 sm:$0xff]  ;;  %p355_p2 = scmp.ne.s32.totalorder %s205_s18, %s354_s2  ;;  %p360_p4 = scmp.lt.s32.totalorder %s354_s2, %s354_s2 }
  0x2f   :  { %p361_p5 = por %p360_p4, %p359_p3 }
  0x31   :  { %p362_p6 = pnand %p361_p5, %p355_p2 }
  0x32   :  { %278 = vmatpush3.bf16.xpose.msra.mxu0 %v275_v5 }
  0x33   :  { %280 = vmatprep.subr.bf16.mxu0 %v279_v9 }
  0x3a   :  { %282 = vmatpush3.bf16.xpose.msra.mxu0 %v279_v9 }
  0x3b   :  { %284 = vmatprep.subr.bf16.mxu0 %v283_v12 }
  0x42   :  { %286 = vmatpush3.bf16.xpose.msra.mxu0 %v283_v12 }
  0x43   :  { %288 = vmatprep.subr.bf16.mxu0 %v287_v15 }
  0x4a   :  { %290 = vmatpush3.bf16.xpose.msra.mxu0 %v287_v15 }
  0x4b   :  { %292 = vmatprep.subr.bf16.mxu0 %v291_v18 }
  0x52   :  { %294 = vmatpush3.bf16.xpose.msra.mxu0 %v291_v18 }
  0x53   :  { %296 = vmatprep.subr.bf16.mxu0 %v295_v21 }
  0x5a   :  { %298 = vmatpush3.bf16.xpose.msra.mxu0 %v295_v21 }
  0x5b   :  { %300 = vmatprep.subr.bf16.mxu0 %v299_v24 }
  0x62   :  { %302 = vmatpush3.bf16.xpose.msra.mxu0 %v299_v24 }
  0x69   :  { %269 = vmatmul.mubr.f32.vlgmr.msra.gmra.mrb[0].mxu0 %v55_v25 }
 0x13c   :  { %v270_v26 = vpop.f32.mrb[0].mxu0 }
 0x13d   :  { %v138_v27 = vpop.f32.mrb[1].mxu0 }
 0x13e   :  { %v156_v28 = vadd.f32 %v270_v26, %v138_v27 }
 0x140   :  { %v157_v29 = vrot.slane %v156_v28, 4 }
 0x142   :  { %v158_v30 = vadd.f32 %v157_v29, %v156_v28 }
 0x144   :  { %v159_v31 = vrot.slane %v158_v30, 2 }
 0x146   :  { %v160_v32 = vadd.f32 %v159_v31, %v158_v30 }
 0x148   :  { %v161_v33 = vrot.slane %v160_v32, 1 }
 0x14a   :  { %v162_v34 = vadd.f32 %v161_v33, %v160_v32 }
 0x14c   :  { %v163_v35 = vmul.f32 0.0625, %v162_v34 }
 0x14e   :  { %v164_v36 = vsub.f32 %v138_v27, %v163_v35  ;;  %v165_v37 = vsub.f32 %v270_v26, %v163_v35 }
 0x150   :  { %v166_v38 = vmul.f32 %v164_v36, %v164_v36  ;;  %v167_v39 = vmul.f32 %v165_v37, %v165_v37 }
 0x152   :  { %v168_v40 = vadd.f32 %v167_v39, %v166_v38 }
 0x154   :  { %v169_v41 = vrot.slane %v168_v40, 4 }
 0x156   :  { %v170_v42 = vadd.f32 %v169_v41, %v168_v40 }
 0x158   :  { %v171_v43 = vrot.slane %v170_v42, 2 }
 0x15a   :  { %v172_v44 = vadd.f32 %v171_v43, %v170_v42 }
 0x15c   :  { %v173_v45 = vrot.slane %v172_v44, 1 }
 0x15e   :  { %v174_v46 = vadd.f32 %v173_v45, %v172_v44 }
 0x160   :  { %v175_v47 = vmul.f32 0.0625, %v174_v46 }
 0x162   :  { %v176_v48 = vadd.f32 1e-05, %v175_v47 }
 0x164   :  { %308 = vrsqrt.f32 %v176_v48 }
 0x16e   :  { %v309_v53 = vpop.eup %308 }
 0x16f   :  { %v179_v54 = vmul.f32 %v309_v53, %v178_v51 }
 0x171   :  { %v183_v55 = vrot.slane %v179_v54, %v182_v52 }
 0x173   :  { %v184_v57 = vmul.f32 %v183_v55, %v164_v36  ;;  %v185_v58 = vmul.f32 %v183_v55, %v165_v37 }
 0x175   :  { %v193_v59 = vadd.f32 %v217_v56, %v184_v57  ;;  %v194_v60 = vadd.f32 %v217_v56, %v185_v58 }
 0x177   :  { %v195_v61 = vmax.f32 %v193_v59, 0.0  ;;  %v196_v62 = vmax.f32 %v194_v60, 0.0 }
 0x179   :  { %197 = vst [vmem:[#allocation8] sm:$0xff] %v195_v61  ;;  %198 = vst [vmem:[#allocation8 + $0x8] sm:$0xff] %v196_v62 }
 0x17a   :  { %365 = shalt.err (!%p362_p6)
}
 0x17b   :  { %s366_s20 = scalar_lea.hbm %s467_s4, 256 }
 0x17c   :  { %p367_p7 = scmp.ne.s32.totalorder %s467_s4, %s366_s20  ;;  %p370_p8 = scmp.lt.u32.totalorder %s366_s20, %s467_s4 }
 0x17e   :  { %p372_p9 = pnand %p370_p8, %p367_p7 }
 0x180   :  { %375 = shalt.err (!%p372_p9)
}
 0x181   :  { %210 = dma.vmem_to_hbm [thread:$0]  %s205_s18, 256, %s467_s4, [#allocation5], %s383_s25, %s383_s25, %s384_s26  }
 0x182   :  { %380 = dma.done.wait [#allocation5], 256  }
 0x183   :  { %381 = vsyncadd [#allocation5], 4294967040 }
 0x184   :  { %214 = vsyncpa [#allocation4], 1 }
 0x185   :  { %215 = vsyncpa [#allocation7], 1 }
 0x186   :  { %216 = vsyncpa [#allocation5], 1 }

</bundles_post_ra>
